<compile_context>
chip_gen: v7x
topology: tpu7x:2x2x1
jax: 0.10.0
libtpu: 0.0.40
codegen_flags: <defaults>
</compile_context>

<pallas_src>
import jax
import jax.numpy as jnp
from jax.experimental import pallas as pl
from jax.experimental.pallas import tpu as pltpu


def siglip_embed_kernel(p_ref, w_ref, pos_ref, o_ref):
    # p_ref:   (1, tile_m, Kp)  flattened patches for one (row-tile, batch)
    # w_ref:   (Kp, D)          conv weight, reshaped + transposed, K-padded
    # pos_ref: (tile_m, D)      position embedding rows (conv bias pre-folded in)
    # o_ref:   (1, tile_m, D)   output embeddings
    x = p_ref[0]                                               # (tile_m, Kp)
    y = jnp.dot(x, w_ref[...], preferred_element_type=jnp.float32)
    y = y + pos_ref[...].astype(jnp.float32)
    o_ref[0] = y.astype(o_ref.dtype)


def _choose_tile_m(N, B, max_tile=256):
    """Row-tile size: big MXU tiles, multiple of 8, and (when possible) an even
    total number of grid steps so v7x's two TensorCores split evenly."""
    base = min(max_tile, ((N + 7) // 8) * 8)
    for tm in (base, 128, 64):
        if tm <= 0 or tm > base:
            continue
        if (B * pl.cdiv(N, tm)) % 2 == 0:
            return tm
    return base


def prepare_siglip_embed_params(conv_weight, conv_bias, pos_embedding,
                                compute_dtype=jnp.bfloat16):
    """One-time parameter prep (do NOT call per forward):
       conv_weight (D, C, P, P) [nn.Conv2d layout] -> (Kp, D) input-major,
       K zero-padded to a multiple of 128, bias folded into the pos embedding."""
    D, C, P, P2 = conv_weight.shape
    assert P == P2
    K = C * P * P
    Kp = pl.cdiv(K, 128) * 128
    w = conv_weight.reshape(D, K).T                     # (K, D), (c, ph, pw) order
    if Kp != K:
        w = jnp.pad(w, ((0, Kp - K), (0, 0)))
    w = w.astype(compute_dtype)
    pos_plus_bias = (pos_embedding.astype(jnp.float32)
                     + conv_bias.astype(jnp.float32)[None, :]).astype(compute_dtype)
    return w, pos_plus_bias


def siglip_vision_embeddings(pixel_values, w_kd, pos_plus_bias, *,
                             patch_size, tile_m=None,
                             compute_dtype=jnp.bfloat16):
    """pixel_values: (B, C, H, W); w_kd: (Kp, D) from prepare_siglip_embed_params;
    pos_plus_bias: (N, D) with N = (H//P)*(W//P).  Returns (B, N, D) in
    pixel_values.dtype."""
    B, C, H, W = pixel_values.shape
    Kp, D = w_kd.shape
    P = patch_size
    Hp, Wp = H // P, W // P
    N = Hp * Wp
    K = C * P * P
    assert Kp == pl.cdiv(K, 128) * 128
    assert pos_plus_bias.shape == (N, D)

    # --- patch extraction (layout plumbing, XLA outside the kernel, in bf16) ---
    # 'valid' conv: drop trailing rows/cols that don't fill a full patch.
    # TODO(synk): fuse this rearrangement into the kernel to kill the extra HBM
    # round-trip (see module docstring).
    px = pixel_values[:, :, :Hp * P, :Wp * P].astype(compute_dtype)
    patches = px.reshape(B, C, Hp, P, Wp, P)
    patches = patches.transpose(0, 2, 4, 1, 3, 5).reshape(B, N, K)  # (c,ph,pw)
    if Kp != K:
        patches = jnp.pad(patches, ((0, 0), (0, 0), (0, Kp - K)))

    # --- row tiling: pad N up to a multiple of tile_m ---
    if tile_m is None:
        tile_m = _choose_tile_m(N, B)
    n_blocks = pl.cdiv(N, tile_m)
    Npad = n_blocks * tile_m
    pos = pos_plus_bias
    if Npad != N:
        patches = jnp.pad(patches, ((0, 0), (0, Npad - N), (0, 0)))
        pos = jnp.pad(pos, ((0, Npad - N), (0, 0)))

    out_dtype = pixel_values.dtype
    c_item = jnp.dtype(compute_dtype).itemsize
    o_item = jnp.dtype(out_dtype).itemsize
    cost = pl.CostEstimate(
        flops=2 * B * Npad * Kp * D,
        transcendentals=0,
        bytes_accessed=(B * Npad * Kp + Kp * D + Npad * D) * c_item
        + B * Npad * D * o_item,
    )

    out = pl.pallas_call(
        siglip_embed_kernel,
        out_shape=jax.ShapeDtypeStruct((B, Npad, D), out_dtype),
        grid_spec=pltpu.PrefetchScalarGridSpec(
            num_scalar_prefetch=0,
            # Batch is the fastest-varying axis: pos/weight block indices are
            # constant across it, so their DMAs are skipped between batches.
            grid=(n_blocks, B),
            in_specs=[
                pl.BlockSpec((1, tile_m, Kp), lambda i, bi: (bi, i, 0)),  # patches
                pl.BlockSpec((Kp, D), lambda i, bi: (0, 0)),              # weight (resident)
                pl.BlockSpec((tile_m, D), lambda i, bi: (i, 0)),          # pos+bias rows
            ],
            out_specs=pl.BlockSpec((1, tile_m, D), lambda i, bi: (bi, i, 0)),
        ),
        compiler_params=pltpu.CompilerParams(
            dimension_semantics=("parallel", "parallel")),
        cost_estimate=cost,
    )(patches, w_kd, pos)

    return out[:, :N, :]


def reference_embeddings(pixel_values, conv_weight, conv_bias, pos_embedding):
    """Pure-JAX f32 reference using a real convolution (independent code path)."""
    P = conv_weight.shape[-1]
    out = jax.lax.conv_general_dilated(
        pixel_values, conv_weight,
        window_strides=(P, P), padding="VALID",
        dimension_numbers=("NCHW", "OIHW", "NCHW"))
    out = out + conv_bias[None, :, None, None]
    B, D, Hp, Wp = out.shape
    out = out.reshape(B, D, Hp * Wp).transpose(0, 2, 1)       # (B, N, D)
    return out + pos_embedding[None]


if __name__ == "__main__":
    # Small config consistent with the module: image 32x32, patch 8 -> 16 patches,
    # 3 channels, hidden (embed_dim) 32.
    batch, channels, image_size, patch_size, hidden = 2, 3, 32, 8, 32
    num_patches = (image_size // patch_size) ** 2

    key = jax.random.PRNGKey(0)
    kx, kw, kb, kp = jax.random.split(key, 4)

    pixel_values = jax.random.normal(
        kx, (batch, channels, image_size, image_size), dtype=jnp.float32)
    # nn.Conv2d parameter shapes: weight (out, in, kh, kw), bias (out,)
    conv_weight = jax.random.normal(
        kw, (hidden, channels, patch_size, patch_size), dtype=jnp.float32) * 0.02
    conv_bias = jax.random.normal(kb, (hidden,), dtype=jnp.float32) * 0.02
    # nn.Embedding weight: (num_positions, embed_dim); position_ids = arange(N)
    pos_embedding = jax.random.normal(
        kp, (num_patches, hidden), dtype=jnp.float32) * 0.02

    # One-time parameter prep (reshape/transpose/pad weight, fold bias into pos).
    w_kd, pos_plus_bias = prepare_siglip_embed_params(
        conv_weight, conv_bias, pos_embedding, compute_dtype=jnp.bfloat16)

    y = siglip_vision_embeddings(pixel_values, w_kd, pos_plus_bias,
                                 patch_size=patch_size)
    y = jax.block_until_ready(y)

    y_ref = reference_embeddings(pixel_values, conv_weight, conv_bias,
                                 pos_embedding)
    assert y.shape == (batch, num_patches, hidden)
    # bf16 operands with f32 accumulation -> loosened tolerance vs f32 conv ref.
    assert jnp.allclose(y, y_ref, atol=2e-2, rtol=2e-2), "mismatch vs reference"

    print("KERNEL_OK")
</pallas_src>

<mosaic_0001>
module attributes {stable_mosaic.version = 11 : i64} {
  func.func @siglip_embed_kernel(%arg0: i32, %arg1: i32, %arg2: memref<1x16x256xbf16, #tpu.memory_space<vmem>>, %arg3: memref<256x32xbf16, #tpu.memory_space<vmem>>, %arg4: memref<16x32xbf16, #tpu.memory_space<vmem>>, %arg5: memref<1x16x32xf32, #tpu.memory_space<vmem>>) attributes {dimension_semantics = [#tpu.dimension_semantics<parallel>, #tpu.dimension_semantics<parallel>], iteration_bounds = array<i64: 1, 2>, scalar_prefetch = 0 : i64, scratch_operands = 0 : i64, tpu.core_type = #tpu.core_type<tc>, window_params = [{transform_indices = @transform_0, window_bounds = array<i64: 1, 16, 256>}, {pipeline_mode = #tpu.pipeline_mode<synchronous>, transform_indices = @transform_1, window_bounds = array<i64: 256, 32>}, {transform_indices = @transform_2, window_bounds = array<i64: 16, 32>}, {transform_indices = @transform_3, window_bounds = array<i64: 1, 16, 32>}]} {
    %c0 = arith.constant 0 : index
    %c0_0 = arith.constant 0 : index
    %c0_1 = arith.constant 0 : index
    %0 = vector.load %arg2[%c0, %c0_0, %c0_1] : memref<1x16x256xbf16, #tpu.memory_space<vmem>>, vector<1x16x256xbf16>
    %1 = vector.shape_cast %0 : vector<1x16x256xbf16> to vector<16x256xbf16>
    %c0_2 = arith.constant 0 : index
    %c0_3 = arith.constant 0 : index
    %2 = vector.load %arg3[%c0_2, %c0_3] : memref<256x32xbf16, #tpu.memory_space<vmem>>, vector<256x32xbf16>
    %cst = arith.constant dense<0.000000e+00> : vector<16x32xf32>
    %3 = tpu.matmul %1, %2, %cst {dimension_numbers = #tpu.dot_dimension_numbers<[1], [0], [0], [1], [0, 0, 1, 1], [], []>} : vector<16x256xbf16>, vector<256x32xbf16>, vector<16x32xf32> -> vector<16x32xf32>
    %c0_4 = arith.constant 0 : index
    %c0_5 = arith.constant 0 : index
    %4 = vector.load %arg4[%c0_4, %c0_5] : memref<16x32xbf16, #tpu.memory_space<vmem>>, vector<16x32xbf16>
    %5 = arith.extf %4 : vector<16x32xbf16> to vector<16x32xf32>
    %6 = arith.addf %3, %5 : vector<16x32xf32>
    %c0_6 = arith.constant 0 : index
    %c0_7 = arith.constant 0 : index
    %c0_8 = arith.constant 0 : index
    %7 = vector.load %arg5[%c0_6, %c0_7, %c0_8] : memref<1x16x32xf32, #tpu.memory_space<vmem>>, vector<1x16x32xf32>
    %8 = vector.shape_cast %7 : vector<1x16x32xf32> to vector<16x32xf32>
    %9 = vector.shape_cast %6 : vector<16x32xf32> to vector<1x16x32xf32>
    tpu.vector_store %arg5[%c0_6, %c0_7, %c0_8], %9 {strides = array<i32>} : memref<1x16x32xf32, #tpu.memory_space<vmem>>, vector<1x16x32xf32>,
    return
  }
  func.func @transform_0(%arg0: i32, %arg1: i32) -> (i32, i32, i32) {
    %c0_i32 = arith.constant 0 : i32
    %c0_i32_0 = arith.constant 0 : i32
    return %arg1, %arg0, %c0_i32 : i32, i32, i32
  }
  func.func @transform_1(%arg0: i32, %arg1: i32) -> (i32, i32) {
    %c0_i32 = arith.constant 0 : i32
    %c0_i32_0 = arith.constant 0 : i32
    %c0_i32_1 = arith.constant 0 : i32
    return %c0_i32, %c0_i32_0 : i32, i32
  }
  func.func @transform_2(%arg0: i32, %arg1: i32) -> (i32, i32) {
    %c0_i32 = arith.constant 0 : i32
    %c0_i32_0 = arith.constant 0 : i32
    return %arg0, %c0_i32 : i32, i32
  }
  func.func @transform_3(%arg0: i32, %arg1: i32) -> (i32, i32, i32) {
    %c0_i32 = arith.constant 0 : i32
    %c0_i32_0 = arith.constant 0 : i32
    return %arg1, %arg0, %c0_i32 : i32, i32, i32
  }
}

</mosaic_0001>

<bundles_post_ra>
// kernel: tpu_custom_call.1
= control target key start
LH: loop header
LB: loop body
LE: loop exit
PB: predicated region body
PF: predicated region fallthrough
CT: control target
= control target key end

     0   :  { %8 = vsyncpa [#allocation3], 0  ;;  %s932_s0 = inlined_call_operand.vmem [shape: bf16[2,16,256], index: 0, kind: input, shape index: {}]   ;;  %s933_s1 = inlined_call_operand.vmem [shape: bf16[256,32], index: 1, kind: input, shape index: {}]   ;;  %s934_s2 = inlined_call_operand.vmem [shape: bf16[16,32], index: 2, kind: input, shape index: {}]   ;;  %s935_s3 = inlined_call_operand.hbm [shape: f32[2,16,32], index: 3, kind: output, shape index: {}]  }
   0x1   :  { %10 = vsyncpa [#allocation3 + $0x1], 0  ;;  %s766_s12 = smov 0   ;;  %s768_s13 = smov 0  }
   0x2   :  { %s770_s14 = smov 0   ;;  %s772_s15 = smov 0  }
   0x3   :  { %s774_s16 = smov 0   ;;  %s776_s17 = smov 0  }
   0x4 LB: > { %s527_s18 = sadd.s32 4294967295, %s741_s17   ;;  %s528_s19 = sadd.s32 4294967294, %s741_s17   ;;  %s741_s17 = sphi %s776_s17, %s16_s17   ;;  %s737_s16 = sphi %s774_s16, %s942_s16   ;;  %s733_s15 = sphi %s772_s15, %s941_s15   ;;  %s729_s14 = sphi %s770_s14, %s940_s14   ;;  %s725_s13 = sphi %s768_s13, %s939_s13   ;;  %s721_s12 = sphi %s766_s12, %s938_s12  }
   0x5   : > { %s25_s20 = sadd.s32 1, %s737_s16  ;;  %s112_s21 = sadd.s32 1, %s729_s14 }
   0x6   : > { %p26_p0 = scmp.ge.s32.totalorder %s25_s20, 2  ;;  %p122_p1 = scmp.ne.s32.totalorder %s729_s14, %s725_s13 }
   0x7   : > { %p123_p2 = scmp.eq.s32.totalorder %s527_s18, 1  ;;  %p128_p3 = scmp.ne.s32.totalorder %s725_s13, %s721_s12 }
   0x8   : > { %s944_s20 = smov (%p26_p0, %s25_s20), 0  ;;  %p129_p5 = scmp.eq.s32.totalorder %s528_s19, 1 }
   0x9   : > { %p806_p4 = por %p123_p2, %p122_p1  ;;  %s107_s23 = ssub.s32 %s737_s16, %s944_s20 }
   0xa   : > { %p532_p6 = scmp.ge.s32.totalorder %s741_s17, 1  ;;  %p110_p7 = scmp.eq.s32.totalorder %s107_s23, 0 }
   0xb   : > { %p813_p8 = por %p129_p5, %p128_p3  ;;  %p173_p9 = scmp.lt.s32.totalorder %s741_s17, 3 }
   0xc   : > { %s819_s25 = scalar_select %p110_p7, %s729_s14, %s112_s21  }
   0xd   : > { %p174_p10 = pnand %p532_p6, %p173_p9 }
   0xe   : > { %v644_v0 = vld [vmem:[%s933_s1 + $0x40] sm:$0xff] (!%p174_p10)   ;;  %v646_v2 = vld [vmem:[%s933_s1 + $0x48] sm:$0xff] (!%p174_p10)   ;;  %p208_p11 = scmp.lt.s32.totalorder (!%p174_p10), %s733_s15, 1  ;;  %v648_v4 = vld [vmem:[%s933_s1 + $0x50] sm:$0xff] (!%p174_p10)   ;;  %s204_s29 = sand.u32 (!%p174_p10), 1, %s725_s13   ;;  %vm411_vm0 = vcmask (!%p174_p10), 261120  }
   0xf   : > { %177 = sbr.rel (%p174_p10) target bundleno = 281 (0x119), region = 32  ;;  %v645_v1 = vld [vmem:[%s933_s1] sm:$0xff] (!%p174_p10)   ;;  %565 = vmatprep.subr.bf16.mxu0 (!%p174_p10), %v644_v0  ;;  %v647_v3 = vld [vmem:[%s933_s1 + $0x8] sm:$0xff] (!%p174_p10)   ;;  %v649_v5 = vld [vmem:[%s933_s1 + $0x10] sm:$0xff] (!%p174_p10)   ;;  %s533_s30 = sshll.u32 (!%p174_p10), %s204_s29, 4 }
  0x10   : > { %566 = vmatpush3.bf16.msra.mxu0 (!%p174_p10), %v645_v1  ;;  %v650_v6 = vld [vmem:[%s933_s1 + $0x58] sm:$0xff] (!%p174_p10)   ;;  %v652_v8 = vld [vmem:[%s933_s1 + $0x60] sm:$0xff] (!%p174_p10)   ;;  %v654_v10 = vld [vmem:[%s933_s1 + $0x68] sm:$0xff] (!%p174_p10)   ;;  %s206_s7 = scalar_lea.vmem (!%p174_p10), [#allocation2], %s533_s30  ;;  %s560_s9 = sshll.u32 (!%p174_p10), %s733_s15, 8 }
  0x11   : > { %567 = vmatprep.subr.bf16.mxu0 (!%p174_p10), %v646_v2  ;;  %v651_v7 = vld [vmem:[%s933_s1 + $0x18] sm:$0xff] (!%p174_p10)   ;;  %v653_v9 = vld [vmem:[%s933_s1 + $0x20] sm:$0xff] (!%p174_p10)   ;;  %v655_v12 = vld [vmem:[%s933_s1 + $0x28] sm:$0xff] (!%p174_p10)   ;;  %s430_s8 = sshll.u32 (!%p174_p10), %s206_s7, 4  ;;  %s886_s18 = scalar_lea.sflag (!%p174_p10), [#allocation3], %s204_s29  ;;  %s884_s8 = int_to_ptr.vmem [resolvable:$true] %s430_s8 }
  0x12   : > { %v656_v13 = vld [vmem:[%s933_s1 + $0x70] sm:$0xff] (!%p174_p10)   ;;  %v658_v15 = vld [vmem:[%s933_s1 + $0x78] sm:$0xff] (!%p174_p10)   ;;  %v562_v18 = vld [vmem:[%s934_s2] sm:$0xff] (!%p174_p10)   ;;  %s743_s19 = smov (!%p174_p10), [#allocation2]  }
  0x13   : > { %v657_v14 = vld [vmem:[%s933_s1 + $0x30] sm:$0xff] (!%p174_p10)   ;;  %v659_v16 = vld [vmem:[%s933_s1 + $0x38] sm:$0xff] (!%p174_p10)   ;;  %v563_v20 = vunpack.c.l.bf16 (!%p174_p10), %v562_v18  ;;  %v564_v24 = vunpack.c.h.bf16 (!%p174_p10), %v562_v18  ;;  %s667_s21 = sshll.u32 (!%p174_p10), %s743_s19, 4  ;;  %s668_s21 = int_to_ptr.vmem [resolvable:$false] %s667_s21 }
  0x14   : > { %568 = vmatpush3.bf16.msra.mxu0 (!%p174_p10), %v647_v3  ;;  %s669_s23 = scalar_lea.vmem (!%p174_p10), %s668_s21, 512  ;;  %p670_p1 = scmp.lt.s32.totalorder (!%p174_p10), %s884_s8, %s668_s21 }
  0x15   : > { %569 = vmatprep.subr.bf16.mxu0 (!%p174_p10), %v648_v4 }
  0x16   : > { %s209_s11 = scalar_select %p208_p11, %s733_s15, 1 }
  0x17   : > { %s663_s15 = scalar_lea.vmem %s884_s8, 256 }
  0x18   : > { %570 = vmatpush3.bf16.msra.mxu0 %v649_v5  ;;  %s559_s26 = sshll.u32 %s209_s11, 4  ;;  %s882_s11 = scalar_lea.hbm %s935_s3, %s560_s9 }
  0x19   : > { %571 = vmatprep.subr.bf16.mxu0 %v650_v6  ;;  %s216_s4 = scalar_lea.vmem %s932_s0, %s559_s26  ;;  %p664_p12 = scmp.ne.s32.totalorder %s884_s8, %s663_s15 }
  0x1a   : > { %v662_v11 = vld [vmem:[%s216_s4 + $0x4] ss:$8 sps:$4 sm:$0xff]   ;;  %v660_v17 = vld [vmem:[%s216_s4] ss:$8 sps:$4 sm:$0xff]   ;;  %p671_p2 = scmp.lt.s32.totalorder %s669_s23, %s663_s15 }
  0x1b   : > { %402 = vmatprep.mubr.bf16.mxu0 %v662_v11  ;;  %p665_p13 = pnand %p664_p12, %p806_p4 }
  0x1c   : > { %572 = vmatpush3.bf16.msra.mxu0 %v651_v7  ;;  %p672_p3 = por %p671_p2, %p670_p1 }
  0x1d   : > { %573 = vmatprep.subr.bf16.mxu0 %v652_v8  ;;  %p666_p0 = pneg %p665_p13 }
  0x1f   : > { %p673_p5 = pnand %p672_p3, %p666_p0 }
  0x20   : > { %574 = vmatpush3.bf16.msra.mxu0 %v653_v9 }
  0x21   : > { %575 = vmatprep.subr.bf16.mxu0 %v654_v10 }
  0x24   : > { %576 = vmatpush3.bf16.msra.mxu0 %v655_v12 }
  0x25   : > { %577 = vmatprep.subr.bf16.mxu0 %v656_v13 }
  0x28   : > { %578 = vmatpush3.bf16.msra.mxu0 %v657_v14 }
  0x29   : > { %579 = vmatprep.subr.bf16.mxu0 %v658_v15 }
  0x2c   : > { %580 = vmatpush3.bf16.msra.mxu0 %v659_v16 }
  0x2f   : > { %403 = vmatmul.mubr.bf16.vlgmr.msra.gmra.mrb[0].mxu0 %v660_v17 }
 0x102   : > { %v581_v19 = vpop.f32.mrb[0].mxu0 }
 0x103   : > { %v582_v21 = vpop.f32.mrb[1].mxu0 }
 0x104   : > { %v583_v22 = vadd.f32 %v582_v21, %v581_v19  ;;  %v584_v23 = vpop.f32.mrb[2].mxu0 }
 0x105   : > { %v585_v25 = vpop.f32.mrb[3].mxu0 }
 0x106   : > { %v405_v26 = vadd.f32 %v583_v22, %v563_v20  ;;  %v586_v27 = vadd.f32 %v585_v25, %v584_v23 }
 0x108   : > { %412 = vst.msk [vmem:[%s206_s7] sm:$0xff] %vm411_vm0, %v405_v26  ;;  %v408_v28 = vadd.f32 %v586_v27, %v564_v24 }
 0x10a   : > { %413 = vst.msk [vmem:[%s206_s7 + $0x8] sm:$0xff] %vm411_vm0, %v408_v28 }
 0x10b   : > { %676 = shalt.err (!%p673_p5)
}
 0x10c   : > { %s677_s26 = scalar_lea.hbm %s882_s11, 256  ;;  %s681_s29 = scalar_lea.hbm %s935_s3, 512 }
 0x10d   : > { %p678_p6 = scmp.ne.s32.totalorder %s882_s11, %s677_s26  ;;  %p682_p10 = scmp.lt.u32.totalorder %s882_s11, %s935_s3 }
 0x10e   : > { %p683_p11 = scmp.lt.u32.totalorder %s681_s29, %s677_s26  ;;  %p685_p13 = scmp.lt.u32.totalorder %s677_s26, %s882_s11 }
 0x10f   : > { %p679_p7 = pnand %p678_p6, %p806_p4 }
 0x110   : > { %p684_p12 = por %p683_p11, %p682_p10 }
 0x111   : > { %p680_p9 = pneg %p679_p7 }
 0x112   : > { %p686_p0 = por %p685_p13, %p684_p12 }
 0x114   : > { %p687_p1 = pnand %p686_p0, %p680_p9 }
 0x116   : > { %690 = shalt.err (!%p687_p1)
}
 0x117   : > { %s744_s6 = smov 128   ;;  %s745_s7 = smov 8  }
 0x118   : > { %587 = dma.vmem_to_hbm [thread:$0]  (%p806_p4), %s884_s8, 256, %s882_s11, %s886_s18, %s744_s6, %s744_s6, %s745_s7  }
 0x119 PF: > { %p593_p2 = scmp.ge.s32.totalorder %s741_s17, 2  ;;  %s445_s9 = sand.u32 1, %s721_s12  }
 0x11a   : > { %s446_s4 = scalar_lea.sflag [#allocation3], %s445_s9 }
 0x11b   : > { %p590_p3 = pnand %p593_p2, %p813_p8 }
 0x11d   : > { %716 = dma.done.wait (!%p590_p3), %s446_s4, 256  }
 0x11e   : > { %718 = vsyncadd (!%p590_p3), %s446_s4, 4294967040  ;;  %s16_s17 = sadd.s32 1, %s741_s17   ;;  %s938_s12 = smov %s725_s13 }
 0x11f   : > { %p13_p5 = scmp.ge.s32.totalorder %s16_s17, 4   ;;  %s939_s13 = smov %s729_s14 }
 0x120   : > { %s940_s14 = smov %s819_s25  ;;  %s941_s15 = smov %s737_s16 }
 0x121   : > { %s942_s16 = smov %s944_s20  ;;  %15 = sbr.rel (!%p13_p5) target bundleno = 4 (0x4), region = 70 }
 0x128   :  { %451 = vsyncpa [#allocation3], 1 }
 0x129   :  { %453 = vsyncpa [#allocation3 + $0x1], 1 }

</bundles_post_ra>
